<compile_context>
chip_gen: v7x
topology: tpu7x:2x2x1
jax: 0.10.0
libtpu: 0.0.40
codegen_flags: <defaults>
</compile_context>

<pallas_src>
import jax
import jax.numpy as jnp
from jax import lax
from jax.experimental import pallas as pl
from jax.experimental.pallas import tpu as pltpu


D_INPUT, D_SHARED, D_EXPERT = 8, 12, 23
BATCH = 4  # MixtureOfExperts.get_input(): torch.rand(4, 8)


def _affine_kernel(x_ref, slab_ref, o_ref):
    """y = x @ W_eff + b_eff, single MXU pass.

    slab_ref: (d_in + 1, d_out) f32; rows [0:d_in] = W_eff in (in, out)
    layout, row [d_in] = b_eff.
    """
    d_in = x_ref.shape[1]                      # static
    w = slab_ref[:d_in, :]                     # (d_in, d_out)
    b = slab_ref[d_in:d_in + 1, :]             # (1, d_out) -> broadcast over batch
    y = lax.dot_general(
        x_ref[...].astype(jnp.float32), w,
        dimension_numbers=(((1,), (0,)), ((), ())),   # native [M,K] x [K,N]
        preferred_element_type=jnp.float32,
    )
    o_ref[...] = (y + b).astype(o_ref.dtype)


def prepare_moe_params(params):
    """One-time parameter preparation (offline, not on the per-call path).

    Folds the 4 biased Linears of MixtureOfExperts.module (which has no
    nonlinearity between layers) into a single effective affine map and packs
    it into one contiguous slab:
        rows 0..d_in-1 : W_eff, (in_features, out_features) layout
        row  d_in      : b_eff

    params: list of (weight, bias) in PyTorch Linear layout,
            weight: (out_features, in_features), bias: (out_features,).
    """
    d_in = params[0][0].shape[1]
    w_eff = jnp.eye(d_in, dtype=jnp.float32)
    b_eff = jnp.zeros((d_in,), dtype=jnp.float32)
    for w, b in params:
        w_t = w.astype(jnp.float32).T          # (in_f, out_f): pre-transposed
        w_eff = w_eff @ w_t                     # compose affine maps
        b_eff = b_eff @ w_t + b.astype(jnp.float32)
    return jnp.concatenate([w_eff, b_eff[None, :]], axis=0)  # (d_in+1, d_out)


def mixture_of_experts_forward(x, slab):
    """Forward pass of MixtureOfExperts.module.

    x:    [B, 8] float32 input.
    slab: packed effective affine parameters from prepare_moe_params().
    """
    B = x.shape[0]
    d_in = slab.shape[0] - 1
    d_out = slab.shape[1]

    flops = 2 * B * d_in * d_out + B * d_out
    bytes_accessed = (int(x.size) * x.dtype.itemsize
                      + int(slab.size) * slab.dtype.itemsize
                      + B * d_out * x.dtype.itemsize)

    vmem_spec = pl.BlockSpec(memory_space=pltpu.MemorySpace.VMEM)
    return pl.pallas_call(
        _affine_kernel,
        out_shape=jax.ShapeDtypeStruct((B, d_out), x.dtype),
        in_specs=[vmem_spec, vmem_spec],
        out_specs=vmem_spec,
        cost_estimate=pl.CostEstimate(
            flops=flops, transcendentals=0, bytes_accessed=bytes_accessed),
    )(x, slab)


if __name__ == "__main__":
    key = jax.random.PRNGKey(0)

    # (in_features, out_features) for the 4 layers of MixtureOfExperts.module.
    layer_dims = [
        (D_INPUT, D_SHARED),   # nn.Linear(8, 12)
        (D_SHARED, D_EXPERT),  # "shared": nn.Linear(12, 23)
        (D_EXPERT, D_SHARED),  # "expert": nn.Linear(23, 12)
        (D_SHARED, D_INPUT),   # nn.Linear(12, 8)
    ]

    # Deterministic params mimicking PyTorch's default Linear init
    # (uniform(-1/sqrt(in_f), 1/sqrt(in_f)) for both weight and bias).
    params = []
    for in_f, out_f in layer_dims:
        key, kw, kb = jax.random.split(key, 3)
        bound = 1.0 / float(in_f) ** 0.5
        w = jax.random.uniform(kw, (out_f, in_f), jnp.float32, -bound, bound)
        b = jax.random.uniform(kb, (out_f,), jnp.float32, -bound, bound)
        params.append((w, b))

    key, kx = jax.random.split(key)
    x = jax.random.uniform(kx, (BATCH, D_INPUT), dtype=jnp.float32)  # torch.rand(4, 8)

    # One-time parameter packing / precomposition, then the fused kernel call.
    slab = prepare_moe_params(params)
    y = mixture_of_experts_forward(x, slab)
    jax.block_until_ready(y)

    # Pure-JAX reference: the original chained forward x @ W^T + b per layer.
    h_ref = x
    for w, b in params:
        h_ref = h_ref @ w.T + b

    assert y.shape == (BATCH, D_INPUT)
    assert jnp.allclose(y, h_ref, atol=1e-4, rtol=1e-4), "mismatch vs reference"

    print("KERNEL_OK")
</pallas_src>

<mosaic_0001>
module attributes {stable_mosaic.version = 11 : i64} {
  func.func @_affine_kernel(%arg0: memref<4x8xf32, #tpu.memory_space<vmem>>, %arg1: memref<9x8xf32, #tpu.memory_space<vmem>>, %arg2: memref<4x8xf32, #tpu.memory_space<vmem>>) attributes {dimension_semantics = [], scalar_prefetch = 0 : i64, scratch_operands = 0 : i64, tpu.core_type = #tpu.core_type<tc>} {
    %c0 = arith.constant 0 : index
    %c0_0 = arith.constant 0 : index
    %0 = vector.load %arg1[%c0, %c0_0] : memref<9x8xf32, #tpu.memory_space<vmem>>, vector<8x8xf32>
    %c8 = arith.constant 8 : index
    %c0_1 = arith.constant 0 : index
    %1 = vector.load %arg1[%c8, %c0_1] : memref<9x8xf32, #tpu.memory_space<vmem>>, vector<1x8xf32>
    %c0_2 = arith.constant 0 : index
    %c0_3 = arith.constant 0 : index
    %2 = vector.load %arg0[%c0_2, %c0_3] : memref<4x8xf32, #tpu.memory_space<vmem>>, vector<4x8xf32>
    %cst = arith.constant dense<0.000000e+00> : vector<4x8xf32>
    %3 = tpu.matmul %2, %0, %cst {dimension_numbers = #tpu.dot_dimension_numbers<[1], [0], [0], [1], [0, 0, 1, 1], [], []>} : vector<4x8xf32>, vector<8x8xf32>, vector<4x8xf32> -> vector<4x8xf32>
    %4 = vector.broadcast %1 : vector<1x8xf32> to vector<4x8xf32>
    %5 = arith.addf %3, %4 : vector<4x8xf32>
    %c0_4 = arith.constant 0 : index
    %c0_5 = arith.constant 0 : index
    %6 = vector.load %arg2[%c0_4, %c0_5] : memref<4x8xf32, #tpu.memory_space<vmem>>, vector<4x8xf32>
    tpu.vector_store %arg2[%c0_4, %c0_5], %5 {strides = array<i32>} : memref<4x8xf32, #tpu.memory_space<vmem>>, vector<4x8xf32>,
    return
  }
}

</mosaic_0001>

<bundles_post_ra>
// kernel: tpu_custom_call.1
= control target key start
LH: loop header
LB: loop body
LE: loop exit
PB: predicated region body
PF: predicated region fallthrough
CT: control target
= control target key end

     0   :  { %vm19_vm0 = vcmask 64512   ;;  %v145_v2 = vmov 0.0   ;;  %vm146_vm1 = vmmov 0   ;;  %s184_s0 = inlined_call_operand.vmem [shape: f32[4,8], index: 0, kind: input, shape index: {}]   ;;  %s185_s1 = inlined_call_operand.vmem [shape: f32[9,8], index: 1, kind: input, shape index: {}]   ;;  %s186_s2 = inlined_call_operand.hbm [shape: f32[4,8], index: 2, kind: output, shape index: {}]  }
   0x1   :  { %v12_v0 = vld [vmem:[%s185_s1] sm:$0xff]  ;;  %113 = vmatprep.subr.mxu0 %v145_v2  ;;  %115 = vmatprep.mubr.msk.f32.mxu0 %vm146_vm1, %v145_v2 }
   0x2   :  { %v14_v1 = vld [vmem:[%s184_s0] sm:$0xf] }
   0x3   :  { %7 = vsyncpa [#allocation3], 0  ;;  %114 = vmatpush3.msra.mxu0 %v12_v0  ;;  %v109_v3 = vld [vmem:[%s185_s1 + $0x8] ss:$0 sm:$0xff]  ;;  %s147_s15 = smov [#allocation2]   ;;  %vm93_vm2 = vcmask 60416  }
   0x4   :  { %116 = vmatmul.mubr.msk.f32.vlgmr.msra.gmra.mrb[0].mxu0 %vm19_vm0, %v14_v1  ;;  %s101_s16 = sshll.u32 %s147_s15, 4  ;;  %s102_s16 = int_to_ptr.vmem [resolvable:$true] %s101_s16 }
   0x5   :  { %s121_s0 = scalar_lea.vmem %s102_s16, 64  ;;  %p126_p1 = scmp.lt.s32.totalorder %s102_s16, %s102_s16 }
   0x6   :  { %p122_p0 = scmp.ne.s32.totalorder %s102_s16, %s121_s0  ;;  %p127_p2 = scmp.lt.s32.totalorder %s121_s0, %s121_s0 }
   0x8   :  { %p128_p3 = por %p127_p2, %p126_p1 }
   0xa   :  { %p129_p4 = pnand %p128_p3, %p122_p0 }
  0xd7   :  { %v89_v4 = vpop.f32.mrb[0].mxu0 }
  0xd8   :  { %v90_v5 = vadd.f32 %v109_v3, %v89_v4  ;;  %v117_v6 = vpop.f32.mrb[1].mxu0 }
  0xda   :  { %94 = vst.msk [vmem:[#allocation2] sm:$0xf] %vm93_vm2, %v90_v5 }
  0xdb   :  { %132 = shalt.err (!%p129_p4)
}
  0xdc   :  { %s133_s19 = scalar_lea.hbm %s186_s2, 64 }
  0xdd   :  { %p134_p5 = scmp.ne.s32.totalorder %s186_s2, %s133_s19  ;;  %p137_p6 = scmp.lt.u32.totalorder %s133_s19, %s186_s2 }
  0xdf   :  { %p139_p7 = pnand %p137_p6, %p134_p5 }
  0xe1   :  { %142 = shalt.err (!%p139_p7)
}
  0xe2   :  { %104 = dma.vmem_to_hbm [thread:$0]  %s102_s16, 64, %s186_s2, [#allocation3]  }
  0xe3   :  { %143 = dma.done.wait [#allocation3], 64  }
  0xe4   :  { %144 = vsyncadd [#allocation3], 4294967232 }
  0xe5   :  { %108 = vsyncpa [#allocation3], 1 }

</bundles_post_ra>
